<compile_context>
chip_gen: v5e
topology: v5e:2x2
jax: 0.10.0
libtpu: 0.0.40
codegen_flags: <defaults>
</compile_context>

<pallas_src>
import jax
import jax.numpy as jnp
from jax.experimental import pallas as pl
from jax.experimental.pallas import tpu as pltpu


def lstm_textrnn_kernel(x_ref, h0_ref, c0_ref, wih_ref, whh_ref, b_ref,
                        wfc_ref, bfc_ref, out_ref):
    B, H = h0_ref.shape
    T = x_ref.shape[0] // B

    # Hoisted, non-recurrent input projection for ALL time steps in one MXU op:
    # (T*B, E)bf16 @ (E, 4H)bf16 -> (T*B, 4H)f32, bias folded in once.
    x_proj = jnp.dot(x_ref[...], wih_ref[...],
                     preferred_element_type=jnp.float32) + b_ref[...]

    whh = whh_ref[...]            # (H, 4H) bf16, stays resident in vregs/VMEM
    h = h0_ref[...]               # (B, H) f32 recurrent state
    c = c0_ref[...]               # (B, H) f32 cell state

    # Recurrence fully unrolled inside this single kernel invocation.
    for t in range(T):
        # Only the h-dependent half of the gate pre-activation is sequential.
        gates = x_proj[t * B:(t + 1) * B, :] + jnp.dot(
            h.astype(jnp.bfloat16), whh, preferred_element_type=jnp.float32)

        # Full-width transcendentals on the (B, 4H) tile (EUP), then static
        # lane slices.  PyTorch LSTM gate ordering is [i, f, g, o].
        sig = jax.nn.sigmoid(gates)
        tnh = jnp.tanh(gates)
        i_g = sig[:, 0 * H:1 * H]
        f_g = sig[:, 1 * H:2 * H]
        g_g = tnh[:, 2 * H:3 * H]
        o_g = sig[:, 3 * H:4 * H]

        # Cell/hidden update kept in f32 (VPU + EUP tanh).
        c = f_g * c + i_g * g_g
        h = o_g * jnp.tanh(c)

    # Final FC on the last hidden state (== out[:, -1, :] for 1-layer uni LSTM).
    out_ref[...] = (jnp.dot(h.astype(jnp.bfloat16), wfc_ref[...],
                            preferred_element_type=jnp.float32)
                    + bfc_ref[...])


def textrnn_forward(x_ids, emb_weight, h0, c0, w_ih, w_hh, b_ih, b_hh,
                    w_fc, b_fc):
    """x_ids: (B, T) int32 token ids. Returns logits (B, label_num) in f32."""
    B, T = x_ids.shape
    H = h0.shape[1]
    L = w_fc.shape[0]

    # Embedding lookup gathered directly into time-major (T*B, E) layout: we
    # transpose the tiny id matrix instead of the embedded tensor.
    ids_tm = jnp.transpose(x_ids).reshape(-1)                          # (T*B,)
    x_emb = jnp.take(emb_weight, ids_tm, axis=0).astype(jnp.bfloat16)  # (T*B, E)

    # bf16 MXU operands; biases / state stay f32.
    wih_t = jnp.transpose(w_ih).astype(jnp.bfloat16)               # (E, 4H)
    whh_t = jnp.transpose(w_hh).astype(jnp.bfloat16)               # (H, 4H)
    b = (b_ih + b_hh).reshape(1, 4 * H).astype(jnp.float32)        # (1, 4H)
    wfc_t = jnp.transpose(w_fc).astype(jnp.bfloat16)               # (H, L)
    bfc = b_fc.reshape(1, L).astype(jnp.float32)                   # (1, L)

    vmem = pl.BlockSpec(memory_space=pltpu.MemorySpace.VMEM)
    # Single invocation (no grid): all operands are tiny and live in VMEM for
    # the whole recurrence (weight-stationary).  If B ever scales, add a batch
    # grid axis with dimension_semantics=("parallel",) so v7x's two TensorCores
    # each run part of the batch; time itself is inherently sequential.
    out = pl.pallas_call(
        lstm_textrnn_kernel,
        out_shape=jax.ShapeDtypeStruct((B, L), jnp.float32),
        in_specs=[vmem] * 8,
        out_specs=vmem,
    )(x_emb, h0.astype(jnp.float32), c0.astype(jnp.float32),
      wih_t, whh_t, b, wfc_t, bfc)
    return out


def reference_forward_f32(x_ids, emb_weight, h0, c0, w_ih, w_hh, b_ih, b_hh,
                          w_fc, b_fc):
    """Pure-JAX f32 reference mirroring torch.nn.LSTM + Linear exactly."""
    x_emb = jnp.take(emb_weight, x_ids, axis=0).astype(jnp.float32)  # (B, T, E)
    H = h0.shape[1]

    def step(carry, x_t):
        h, c = carry
        gates = x_t @ w_ih.T + h @ w_hh.T + b_ih + b_hh
        i = jax.nn.sigmoid(gates[:, 0 * H:1 * H])
        f = jax.nn.sigmoid(gates[:, 1 * H:2 * H])
        g = jnp.tanh(gates[:, 2 * H:3 * H])
        o = jax.nn.sigmoid(gates[:, 3 * H:4 * H])
        c = f * c + i * g
        h = o * jnp.tanh(c)
        return (h, c), None

    (h_last, _), _ = jax.lax.scan(step, (h0, c0),
                                  jnp.transpose(x_emb, (1, 0, 2)))
    return h_last @ w_fc.T + b_fc


def reference_forward_mixed(x_ids, emb_weight, h0, c0, w_ih, w_hh, b_ih, b_hh,
                            w_fc, b_fc):
    """Pure-JAX reference with the same bf16-operand / f32-accumulate recipe."""
    H = h0.shape[1]
    x_emb = jnp.take(emb_weight, x_ids, axis=0).astype(jnp.bfloat16)  # (B, T, E)
    wih_t = jnp.transpose(w_ih).astype(jnp.bfloat16)
    whh_t = jnp.transpose(w_hh).astype(jnp.bfloat16)
    wfc_t = jnp.transpose(w_fc).astype(jnp.bfloat16)
    b = (b_ih + b_hh).astype(jnp.float32)

    def step(carry, x_t):
        h, c = carry
        gates = (jnp.dot(x_t, wih_t, preferred_element_type=jnp.float32)
                 + jnp.dot(h.astype(jnp.bfloat16), whh_t,
                           preferred_element_type=jnp.float32)
                 + b)
        i = jax.nn.sigmoid(gates[:, 0 * H:1 * H])
        f = jax.nn.sigmoid(gates[:, 1 * H:2 * H])
        g = jnp.tanh(gates[:, 2 * H:3 * H])
        o = jax.nn.sigmoid(gates[:, 3 * H:4 * H])
        c = f * c + i * g
        h = o * jnp.tanh(c)
        return (h, c), None

    (h_last, _), _ = jax.lax.scan(step, (h0, c0),
                                  jnp.transpose(x_emb, (1, 0, 2)))
    return (jnp.dot(h_last.astype(jnp.bfloat16), wfc_t,
                    preferred_element_type=jnp.float32) + b_fc)


if __name__ == "__main__":
    # Small deterministic configuration consistent with the module's __init__.
    B, T = 2, 8          # batch, sequence length
    V, E = 50, 32        # vocab size, embedding dim
    H = 32               # hidden_size
    L = 4                # label_num
    # num_layers=1, bidirectional=False, rnn_type='lstm'

    key = jax.random.PRNGKey(0)
    keys = jax.random.split(key, 10)

    emb_weight = jax.random.normal(keys[0], (V, E), dtype=jnp.float32) * 0.1
    w_ih = jax.random.normal(keys[1], (4 * H, E), dtype=jnp.float32) * 0.1
    w_hh = jax.random.normal(keys[2], (4 * H, H), dtype=jnp.float32) * 0.1
    b_ih = jax.random.normal(keys[3], (4 * H,), dtype=jnp.float32) * 0.1
    b_hh = jax.random.normal(keys[4], (4 * H,), dtype=jnp.float32) * 0.1
    w_fc = jax.random.normal(keys[5], (L, H), dtype=jnp.float32) * 0.1
    b_fc = jax.random.normal(keys[6], (L,), dtype=jnp.float32) * 0.1

    # torch.randn h0/c0 in the original forward is nondeterministic; use
    # deterministic draws from the same PRNG family instead.
    h0 = jax.random.normal(keys[7], (B, H), dtype=jnp.float32)
    c0 = jax.random.normal(keys[8], (B, H), dtype=jnp.float32)

    x_ids = jax.random.randint(keys[9], (B, T), 0, V, dtype=jnp.int32)

    logits = textrnn_forward(x_ids, emb_weight, h0, c0, w_ih, w_hh,
                             b_ih, b_hh, w_fc, b_fc)
    logits = jax.block_until_ready(logits)
    assert logits.shape == (B, L)

    # Tight check vs. a pure-JAX reference using the same bf16-operand /
    # f32-accumulate recipe (validates the kernel's recurrence structure).
    ref_mixed = reference_forward_mixed(x_ids, emb_weight, h0, c0, w_ih, w_hh,
                                        b_ih, b_hh, w_fc, b_fc)
    assert jnp.allclose(logits, ref_mixed, atol=2e-3, rtol=2e-3), (logits, ref_mixed)

    # Relaxed check vs. the full-f32 PyTorch-faithful reference (covers the
    # bf16 MXU-operand approximation).
    ref_f32 = reference_forward_f32(x_ids, emb_weight, h0, c0, w_ih, w_hh,
                                    b_ih, b_hh, w_fc, b_fc)
    assert jnp.allclose(logits, ref_f32, atol=3e-2, rtol=3e-2), (logits, ref_f32)

    print("KERNEL_OK")
</pallas_src>

<mosaic_0001>
module attributes {stable_mosaic.version = 11 : i64} {
  func.func @lstm_textrnn_kernel(%arg0: memref<16x32xbf16, #tpu.memory_space<vmem>>, %arg1: memref<2x32xf32, #tpu.memory_space<vmem>>, %arg2: memref<2x32xf32, #tpu.memory_space<vmem>>, %arg3: memref<32x128xbf16, #tpu.memory_space<vmem>>, %arg4: memref<32x128xbf16, #tpu.memory_space<vmem>>, %arg5: memref<1x128xf32, #tpu.memory_space<vmem>>, %arg6: memref<32x4xbf16, #tpu.memory_space<vmem>>, %arg7: memref<1x4xf32, #tpu.memory_space<vmem>>, %arg8: memref<2x4xf32, #tpu.memory_space<vmem>>) attributes {dimension_semantics = [], scalar_prefetch = 0 : i64, scratch_operands = 0 : i64, tpu.core_type = #tpu.core_type<tc>} {
    %c0 = arith.constant 0 : index
    %c0_0 = arith.constant 0 : index
    %0 = vector.load %arg0[%c0, %c0_0] : memref<16x32xbf16, #tpu.memory_space<vmem>>, vector<16x32xbf16>
    %c0_1 = arith.constant 0 : index
    %c0_2 = arith.constant 0 : index
    %1 = vector.load %arg3[%c0_1, %c0_2] : memref<32x128xbf16, #tpu.memory_space<vmem>>, vector<32x128xbf16>
    %cst = arith.constant dense<0.000000e+00> : vector<16x128xf32>
    %2 = tpu.matmul %0, %1, %cst {dimension_numbers = #tpu.dot_dimension_numbers<[1], [0], [0], [1], [0, 0, 1, 1], [], []>} : vector<16x32xbf16>, vector<32x128xbf16>, vector<16x128xf32> -> vector<16x128xf32>
    %c0_3 = arith.constant 0 : index
    %c0_4 = arith.constant 0 : index
    %3 = vector.load %arg5[%c0_3, %c0_4] : memref<1x128xf32, #tpu.memory_space<vmem>>, vector<1x128xf32>
    %4 = vector.broadcast %3 : vector<1x128xf32> to vector<16x128xf32>
    %5 = arith.addf %2, %4 : vector<16x128xf32>
    %c0_5 = arith.constant 0 : index
    %c0_6 = arith.constant 0 : index
    %6 = vector.load %arg4[%c0_5, %c0_6] : memref<32x128xbf16, #tpu.memory_space<vmem>>, vector<32x128xbf16>
    %c0_7 = arith.constant 0 : index
    %c0_8 = arith.constant 0 : index
    %7 = vector.load %arg1[%c0_7, %c0_8] : memref<2x32xf32, #tpu.memory_space<vmem>>, vector<2x32xf32>
    %c0_9 = arith.constant 0 : index
    %c0_10 = arith.constant 0 : index
    %8 = vector.load %arg2[%c0_9, %c0_10] : memref<2x32xf32, #tpu.memory_space<vmem>>, vector<2x32xf32>
    %9 = vector.extract_strided_slice %5 {offsets = [0, 0], sizes = [2, 128], strides = [1, 1]} : vector<16x128xf32> to vector<2x128xf32>
    %10 = arith.truncf %7 : vector<2x32xf32> to vector<2x32xbf16>
    %cst_11 = arith.constant dense<0.000000e+00> : vector<2x128xf32>
    %11 = tpu.matmul %10, %6, %cst_11 {dimension_numbers = #tpu.dot_dimension_numbers<[1], [0], [0], [1], [0, 0, 1, 1], [], []>} : vector<2x32xbf16>, vector<32x128xbf16>, vector<2x128xf32> -> vector<2x128xf32>
    %12 = arith.addf %9, %11 : vector<2x128xf32>
    %13 = arith.negf %12 : vector<2x128xf32>
    %14 = math.exp %13 : vector<2x128xf32>
    %cst_12 = arith.constant 1.000000e+00 : f32
    %15 = vector.broadcast %cst_12 : f32 to vector<2x128xf32>
    %16 = arith.addf %15, %14 : vector<2x128xf32>
    %17 = arith.divf %15, %16 : vector<2x128xf32>
    %18 = math.tanh %12 : vector<2x128xf32>
    %19 = vector.extract_strided_slice %17 {offsets = [0, 0], sizes = [2, 32], strides = [1, 1]} : vector<2x128xf32> to vector<2x32xf32>
    %20 = vector.extract_strided_slice %17 {offsets = [0, 32], sizes = [2, 32], strides = [1, 1]} : vector<2x128xf32> to vector<2x32xf32>
    %21 = vector.extract_strided_slice %18 {offsets = [0, 64], sizes = [2, 32], strides = [1, 1]} : vector<2x128xf32> to vector<2x32xf32>
    %22 = vector.extract_strided_slice %17 {offsets = [0, 96], sizes = [2, 32], strides = [1, 1]} : vector<2x128xf32> to vector<2x32xf32>
    %23 = arith.mulf %20, %8 : vector<2x32xf32>
    %24 = arith.mulf %19, %21 : vector<2x32xf32>
    %25 = arith.addf %23, %24 : vector<2x32xf32>
    %26 = math.tanh %25 : vector<2x32xf32>
    %27 = arith.mulf %22, %26 : vector<2x32xf32>
    %28 = vector.extract_strided_slice %5 {offsets = [2, 0], sizes = [2, 128], strides = [1, 1]} : vector<16x128xf32> to vector<2x128xf32>
    %29 = arith.truncf %27 : vector<2x32xf32> to vector<2x32xbf16>
    %cst_13 = arith.constant dense<0.000000e+00> : vector<2x128xf32>
    %30 = tpu.matmul %29, %6, %cst_13 {dimension_numbers = #tpu.dot_dimension_numbers<[1], [0], [0], [1], [0, 0, 1, 1], [], []>} : vector<2x32xbf16>, vector<32x128xbf16>, vector<2x128xf32> -> vector<2x128xf32>
    %31 = arith.addf %28, %30 : vector<2x128xf32>
    %32 = arith.negf %31 : vector<2x128xf32>
    %33 = math.exp %32 : vector<2x128xf32>
    %cst_14 = arith.constant 1.000000e+00 : f32
    %34 = vector.broadcast %cst_14 : f32 to vector<2x128xf32>
    %35 = arith.addf %34, %33 : vector<2x128xf32>
    %36 = arith.divf %34, %35 : vector<2x128xf32>
    %37 = math.tanh %31 : vector<2x128xf32>
    %38 = vector.extract_strided_slice %36 {offsets = [0, 0], sizes = [2, 32], strides = [1, 1]} : vector<2x128xf32> to vector<2x32xf32>
    %39 = vector.extract_strided_slice %36 {offsets = [0, 32], sizes = [2, 32], strides = [1, 1]} : vector<2x128xf32> to vector<2x32xf32>
    %40 = vector.extract_strided_slice %37 {offsets = [0, 64], sizes = [2, 32], strides = [1, 1]} : vector<2x128xf32> to vector<2x32xf32>
    %41 = vector.extract_strided_slice %36 {offsets = [0, 96], sizes = [2, 32], strides = [1, 1]} : vector<2x128xf32> to vector<2x32xf32>
    %42 = arith.mulf %39, %25 : vector<2x32xf32>
    %43 = arith.mulf %38, %40 : vector<2x32xf32>
    %44 = arith.addf %42, %43 : vector<2x32xf32>
    %45 = math.tanh %44 : vector<2x32xf32>
    %46 = arith.mulf %41, %45 : vector<2x32xf32>
    %47 = vector.extract_strided_slice %5 {offsets = [4, 0], sizes = [2, 128], strides = [1, 1]} : vector<16x128xf32> to vector<2x128xf32>
    %48 = arith.truncf %46 : vector<2x32xf32> to vector<2x32xbf16>
    %cst_15 = arith.constant dense<0.000000e+00> : vector<2x128xf32>
    %49 = tpu.matmul %48, %6, %cst_15 {dimension_numbers = #tpu.dot_dimension_numbers<[1], [0], [0], [1], [0, 0, 1, 1], [], []>} : vector<2x32xbf16>, vector<32x128xbf16>, vector<2x128xf32> -> vector<2x128xf32>
    %50 = arith.addf %47, %49 : vector<2x128xf32>
    %51 = arith.negf %50 : vector<2x128xf32>
    %52 = math.exp %51 : vector<2x128xf32>
    %cst_16 = arith.constant 1.000000e+00 : f32
    %53 = vector.broadcast %cst_16 : f32 to vector<2x128xf32>
    %54 = arith.addf %53, %52 : vector<2x128xf32>
    %55 = arith.divf %53, %54 : vector<2x128xf32>
    %56 = math.tanh %50 : vector<2x128xf32>
    %57 = vector.extract_strided_slice %55 {offsets = [0, 0], sizes = [2, 32], strides = [1, 1]} : vector<2x128xf32> to vector<2x32xf32>
    %58 = vector.extract_strided_slice %55 {offsets = [0, 32], sizes = [2, 32], strides = [1, 1]} : vector<2x128xf32> to vector<2x32xf32>
    %59 = vector.extract_strided_slice %56 {offsets = [0, 64], sizes = [2, 32], strides = [1, 1]} : vector<2x128xf32> to vector<2x32xf32>
    %60 = vector.extract_strided_slice %55 {offsets = [0, 96], sizes = [2, 32], strides = [1, 1]} : vector<2x128xf32> to vector<2x32xf32>
    %61 = arith.mulf %58, %44 : vector<2x32xf32>
    %62 = arith.mulf %57, %59 : vector<2x32xf32>
    %63 = arith.addf %61, %62 : vector<2x32xf32>
    %64 = math.tanh %63 : vector<2x32xf32>
    %65 = arith.mulf %60, %64 : vector<2x32xf32>
    %66 = vector.extract_strided_slice %5 {offsets = [6, 0], sizes = [2, 128], strides = [1, 1]} : vector<16x128xf32> to vector<2x128xf32>
    %67 = arith.truncf %65 : vector<2x32xf32> to vector<2x32xbf16>
    %cst_17 = arith.constant dense<0.000000e+00> : vector<2x128xf32>
    %68 = tpu.matmul %67, %6, %cst_17 {dimension_numbers = #tpu.dot_dimension_numbers<[1], [0], [0], [1], [0, 0, 1, 1], [], []>} : vector<2x32xbf16>, vector<32x128xbf16>, vector<2x128xf32> -> vector<2x128xf32>
    %69 = arith.addf %66, %68 : vector<2x128xf32>
    %70 = arith.negf %69 : vector<2x128xf32>
    %71 = math.exp %70 : vector<2x128xf32>
    %cst_18 = arith.constant 1.000000e+00 : f32
    %72 = vector.broadcast %cst_18 : f32 to vector<2x128xf32>
    %73 = arith.addf %72, %71 : vector<2x128xf32>
    %74 = arith.divf %72, %73 : vector<2x128xf32>
    %75 = math.tanh %69 : vector<2x128xf32>
    %76 = vector.extract_strided_slice %74 {offsets = [0, 0], sizes = [2, 32], strides = [1, 1]} : vector<2x128xf32> to vector<2x32xf32>
    %77 = vector.extract_strided_slice %74 {offsets = [0, 32], sizes = [2, 32], strides = [1, 1]} : vector<2x128xf32> to vector<2x32xf32>
    %78 = vector.extract_strided_slice %75 {offsets = [0, 64], sizes = [2, 32], strides = [1, 1]} : vector<2x128xf32> to vector<2x32xf32>
    %79 = vector.extract_strided_slice %74 {offsets = [0, 96], sizes = [2, 32], strides = [1, 1]} : vector<2x128xf32> to vector<2x32xf32>
    %80 = arith.mulf %77, %63 : vector<2x32xf32>
    %81 = arith.mulf %76, %78 : vector<2x32xf32>
    %82 = arith.addf %80, %81 : vector<2x32xf32>
    %83 = math.tanh %82 : vector<2x32xf32>
    %84 = arith.mulf %79, %83 : vector<2x32xf32>
    %85 = vector.extract_strided_slice %5 {offsets = [8, 0], sizes = [2, 128], strides = [1, 1]} : vector<16x128xf32> to vector<2x128xf32>
    %86 = arith.truncf %84 : vector<2x32xf32> to vector<2x32xbf16>
    %cst_19 = arith.constant dense<0.000000e+00> : vector<2x128xf32>
    %87 = tpu.matmul %86, %6, %cst_19 {dimension_numbers = #tpu.dot_dimension_numbers<[1], [0], [0], [1], [0, 0, 1, 1], [], []>} : vector<2x32xbf16>, vector<32x128xbf16>, vector<2x128xf32> -> vector<2x128xf32>
    %88 = arith.addf %85, %87 : vector<2x128xf32>
    %89 = arith.negf %88 : vector<2x128xf32>
    %90 = math.exp %89 : vector<2x128xf32>
    %cst_20 = arith.constant 1.000000e+00 : f32
    %91 = vector.broadcast %cst_20 : f32 to vector<2x128xf32>
    %92 = arith.addf %91, %90 : vector<2x128xf32>
    %93 = arith.divf %91, %92 : vector<2x128xf32>
    %94 = math.tanh %88 : vector<2x128xf32>
    %95 = vector.extract_strided_slice %93 {offsets = [0, 0], sizes = [2, 32], strides = [1, 1]} : vector<2x128xf32> to vector<2x32xf32>
    %96 = vector.extract_strided_slice %93 {offsets = [0, 32], sizes = [2, 32], strides = [1, 1]} : vector<2x128xf32> to vector<2x32xf32>
    %97 = vector.extract_strided_slice %94 {offsets = [0, 64], sizes = [2, 32], strides = [1, 1]} : vector<2x128xf32> to vector<2x32xf32>
    %98 = vector.extract_strided_slice %93 {offsets = [0, 96], sizes = [2, 32], strides = [1, 1]} : vector<2x128xf32> to vector<2x32xf32>
    %99 = arith.mulf %96, %82 : vector<2x32xf32>
    %100 = arith.mulf %95, %97 : vector<2x32xf32>
    %101 = arith.addf %99, %100 : vector<2x32xf32>
    %102 = math.tanh %101 : vector<2x32xf32>
    %103 = arith.mulf %98, %102 : vector<2x32xf32>
    %104 = vector.extract_strided_slice %5 {offsets = [10, 0], sizes = [2, 128], strides = [1, 1]} : vector<16x128xf32> to vector<2x128xf32>
    %105 = arith.truncf %103 : vector<2x32xf32> to vector<2x32xbf16>
    %cst_21 = arith.constant dense<0.000000e+00> : vector<2x128xf32>
    %106 = tpu.matmul %105, %6, %cst_21 {dimension_numbers = #tpu.dot_dimension_numbers<[1], [0], [0], [1], [0, 0, 1, 1], [], []>} : vector<2x32xbf16>, vector<32x128xbf16>, vector<2x128xf32> -> vector<2x128xf32>
    %107 = arith.addf %104, %106 : vector<2x128xf32>
    %108 = arith.negf %107 : vector<2x128xf32>
    %109 = math.exp %108 : vector<2x128xf32>
    %cst_22 = arith.constant 1.000000e+00 : f32
    %110 = vector.broadcast %cst_22 : f32 to vector<2x128xf32>
    %111 = arith.addf %110, %109 : vector<2x128xf32>
    %112 = arith.divf %110, %111 : vector<2x128xf32>
    %113 = math.tanh %107 : vector<2x128xf32>
    %114 = vector.extract_strided_slice %112 {offsets = [0, 0], sizes = [2, 32], strides = [1, 1]} : vector<2x128xf32> to vector<2x32xf32>
    %115 = vector.extract_strided_slice %112 {offsets = [0, 32], sizes = [2, 32], strides = [1, 1]} : vector<2x128xf32> to vector<2x32xf32>
    %116 = vector.extract_strided_slice %113 {offsets = [0, 64], sizes = [2, 32], strides = [1, 1]} : vector<2x128xf32> to vector<2x32xf32>
    %117 = vector.extract_strided_slice %112 {offsets = [0, 96], sizes = [2, 32], strides = [1, 1]} : vector<2x128xf32> to vector<2x32xf32>
    %118 = arith.mulf %115, %101 : vector<2x32xf32>
    %119 = arith.mulf %114, %116 : vector<2x32xf32>
    %120 = arith.addf %118, %119 : vector<2x32xf32>
    %121 = math.tanh %120 : vector<2x32xf32>
    %122 = arith.mulf %117, %121 : vector<2x32xf32>
    %123 = vector.extract_strided_slice %5 {offsets = [12, 0], sizes = [2, 128], strides = [1, 1]} : vector<16x128xf32> to vector<2x128xf32>
    %124 = arith.truncf %122 : vector<2x32xf32> to vector<2x32xbf16>
    %cst_23 = arith.constant dense<0.000000e+00> : vector<2x128xf32>
    %125 = tpu.matmul %124, %6, %cst_23 {dimension_numbers = #tpu.dot_dimension_numbers<[1], [0], [0], [1], [0, 0, 1, 1], [], []>} : vector<2x32xbf16>, vector<32x128xbf16>, vector<2x128xf32> -> vector<2x128xf32>
    %126 = arith.addf %123, %125 : vector<2x128xf32>
    %127 = arith.negf %126 : vector<2x128xf32>
    %128 = math.exp %127 : vector<2x128xf32>
    %cst_24 = arith.constant 1.000000e+00 : f32
    %129 = vector.broadcast %cst_24 : f32 to vector<2x128xf32>
    %130 = arith.addf %129, %128 : vector<2x128xf32>
    %131 = arith.divf %129, %130 : vector<2x128xf32>
    %132 = math.tanh %126 : vector<2x128xf32>
    %133 = vector.extract_strided_slice %131 {offsets = [0, 0], sizes = [2, 32], strides = [1, 1]} : vector<2x128xf32> to vector<2x32xf32>
    %134 = vector.extract_strided_slice %131 {offsets = [0, 32], sizes = [2, 32], strides = [1, 1]} : vector<2x128xf32> to vector<2x32xf32>
    %135 = vector.extract_strided_slice %132 {offsets = [0, 64], sizes = [2, 32], strides = [1, 1]} : vector<2x128xf32> to vector<2x32xf32>
    %136 = vector.extract_strided_slice %131 {offsets = [0, 96], sizes = [2, 32], strides = [1, 1]} : vector<2x128xf32> to vector<2x32xf32>
    %137 = arith.mulf %134, %120 : vector<2x32xf32>
    %138 = arith.mulf %133, %135 : vector<2x32xf32>
    %139 = arith.addf %137, %138 : vector<2x32xf32>
    %140 = math.tanh %139 : vector<2x32xf32>
    %141 = arith.mulf %136, %140 : vector<2x32xf32>
    %142 = vector.extract_strided_slice %5 {offsets = [14, 0], sizes = [2, 128], strides = [1, 1]} : vector<16x128xf32> to vector<2x128xf32>
    %143 = arith.truncf %141 : vector<2x32xf32> to vector<2x32xbf16>
    %cst_25 = arith.constant dense<0.000000e+00> : vector<2x128xf32>
    %144 = tpu.matmul %143, %6, %cst_25 {dimension_numbers = #tpu.dot_dimension_numbers<[1], [0], [0], [1], [0, 0, 1, 1], [], []>} : vector<2x32xbf16>, vector<32x128xbf16>, vector<2x128xf32> -> vector<2x128xf32>
    %145 = arith.addf %142, %144 : vector<2x128xf32>
    %146 = arith.negf %145 : vector<2x128xf32>
    %147 = math.exp %146 : vector<2x128xf32>
    %cst_26 = arith.constant 1.000000e+00 : f32
    %148 = vector.broadcast %cst_26 : f32 to vector<2x128xf32>
    %149 = arith.addf %148, %147 : vector<2x128xf32>
    %150 = arith.divf %148, %149 : vector<2x128xf32>
    %151 = math.tanh %145 : vector<2x128xf32>
    %152 = vector.extract_strided_slice %150 {offsets = [0, 0], sizes = [2, 32], strides = [1, 1]} : vector<2x128xf32> to vector<2x32xf32>
    %153 = vector.extract_strided_slice %150 {offsets = [0, 32], sizes = [2, 32], strides = [1, 1]} : vector<2x128xf32> to vector<2x32xf32>
    %154 = vector.extract_strided_slice %151 {offsets = [0, 64], sizes = [2, 32], strides = [1, 1]} : vector<2x128xf32> to vector<2x32xf32>
    %155 = vector.extract_strided_slice %150 {offsets = [0, 96], sizes = [2, 32], strides = [1, 1]} : vector<2x128xf32> to vector<2x32xf32>
    %156 = arith.mulf %153, %139 : vector<2x32xf32>
    %157 = arith.mulf %152, %154 : vector<2x32xf32>
    %158 = arith.addf %156, %157 : vector<2x32xf32>
    %159 = math.tanh %158 : vector<2x32xf32>
    %160 = arith.mulf %155, %159 : vector<2x32xf32>
    %161 = arith.truncf %160 : vector<2x32xf32> to vector<2x32xbf16>
    %c0_27 = arith.constant 0 : index
    %c0_28 = arith.constant 0 : index
    %162 = vector.load %arg6[%c0_27, %c0_28] : memref<32x4xbf16, #tpu.memory_space<vmem>>, vector<32x4xbf16>
    %cst_29 = arith.constant dense<0.000000e+00> : vector<2x4xf32>
    %163 = tpu.matmul %161, %162, %cst_29 {dimension_numbers = #tpu.dot_dimension_numbers<[1], [0], [0], [1], [0, 0, 1, 1], [], []>} : vector<2x32xbf16>, vector<32x4xbf16>, vector<2x4xf32> -> vector<2x4xf32>
    %c0_30 = arith.constant 0 : index
    %c0_31 = arith.constant 0 : index
    %164 = vector.load %arg7[%c0_30, %c0_31] : memref<1x4xf32, #tpu.memory_space<vmem>>, vector<1x4xf32>
    %165 = vector.broadcast %164 : vector<1x4xf32> to vector<2x4xf32>
    %166 = arith.addf %163, %165 : vector<2x4xf32>
    %c0_32 = arith.constant 0 : index
    %c0_33 = arith.constant 0 : index
    %167 = vector.load %arg8[%c0_32, %c0_33] : memref<2x4xf32, #tpu.memory_space<vmem>>, vector<2x4xf32>
    tpu.vector_store %arg8[%c0_32, %c0_33], %166 {strides = array<i32>} : memref<2x4xf32, #tpu.memory_space<vmem>>, vector<2x4xf32>,
    return
  }
}

</mosaic_0001>

<bundles_post_ra>
// kernel: tpu_custom_call.1
= control target key start
LH: loop header
LB: loop body
LE: loop exit
PB: predicated region body
PF: predicated region fallthrough
CT: control target
= control target key end

     0   :  { %13 = vsyncpa [#allocation3], 0  ;;  %s1085_s0 = inlined_call_operand.hbm [shape: bf16[16,32], index: 0, kind: input, shape index: {}]   ;;  %s1086_s1 = inlined_call_operand.vmem [shape: f32[2,32], index: 1, kind: input, shape index: {}]   ;;  %s1087_s2 = inlined_call_operand.hbm [shape: f32[2,32], index: 2, kind: input, shape index: {}]   ;;  %s1088_s3 = inlined_call_operand.vmem [shape: bf16[32,128], index: 3, kind: input, shape index: {}]   ;;  %s1089_s4 = inlined_call_operand.hbm [shape: bf16[32,128], index: 4, kind: input, shape index: {}]   ;;  %s1090_s5 = inlined_call_operand.vmem [shape: f32[1,128], index: 5, kind: input, shape index: {}]   ;;  %s1091_s6 = inlined_call_operand.vmem [shape: bf16[32,4], index: 6, kind: input, shape index: {}]   ;;  %s1092_s7 = inlined_call_operand.vmem [shape: f32[1,4], index: 7, kind: input, shape index: {}]   ;;  %s1093_s8 = inlined_call_operand.hbm [shape: f32[2,4], index: 8, kind: output, shape index: {}]  }
   0x1   :  { %14 = vsyncpa [#allocation6], 0  ;;  %s36_s29 = sshll.u32 %s1087_s2, 4  ;;  %s37_s29 = int_to_ptr.hbm [resolvable:$true] %s36_s29 }
   0x2   :  { %15 = vsyncpa [#allocation4], 0  ;;  %s937_s30 = smov [#allocation5]   ;;  %s20_s12 = sshll.u32 %s1085_s0, 4  ;;  %s21_s12 = int_to_ptr.hbm [resolvable:$true] %s20_s12 }
   0x3   :  { %s38_s9 = sshll.u32 %s937_s30, 4  ;;  %s938_s13 = smov [#allocation2]   ;;  %s39_s9 = int_to_ptr.vmem [resolvable:$true] %s38_s9 }
   0x4   :  { %41 = dma.hbm_to_vmem [thread:$0]  %s37_s29, 32, %s39_s9, [#allocation6]  }
   0x5   :  { %s22_s14 = sshll.u32 %s938_s13, 4  ;;  %s939_s15 = smov 64   ;;  %s23_s14 = int_to_ptr.vmem [resolvable:$true] %s22_s14 }
   0x6   :  { %s940_s16 = smov 4   ;;  %s48_s18 = sshll.u32 %s1089_s4, 4  ;;  %s49_s18 = int_to_ptr.hbm [resolvable:$true] %s48_s18 }
   0x7   :  { %28 = dma.hbm_to_vmem [thread:$0]  %s21_s12, 128, %s23_s14, [#allocation3], %s939_s15, %s939_s15, %s940_s16  }
   0x8   :  { %s941_s19 = smov [#allocation7]  }
   0x9   :  { %s50_s20 = sshll.u32 %s941_s19, 4  ;;  %s51_s20 = int_to_ptr.vmem [resolvable:$true] %s50_s20 }
   0xa   :  { %56 = dma.hbm_to_vmem [thread:$0]  %s49_s18, 256, %s51_s20, [#allocation6], %s939_s15, %s939_s15, %s940_s16  }
   0xb   :  { %931 = dma.done.wait [#allocation3], 128  }
   0xc   :  { %932 = vsyncadd [#allocation3], 4294967168 }
   0xd   :  { %933 = dma.done.wait [#allocation6], 288  }
   0xe   :  { %934 = vsyncadd [#allocation6], 4294967008  ;;  %v757_v0 = vld [vmem:[%s1088_s3 + $0x8] sm:$0xff]  ;;  %v759_v1 = vld [vmem:[#allocation7 + $0x8] sm:$0xff]  ;;  %vm103_vm0 = vcmask 261120   ;;  %s942_s25 = smov 32  }
   0xf   :  { %v756_v2 = vld [vmem:[%s1088_s3] sm:$0xff]  ;;  %v758_v3 = vld [vmem:[#allocation7] sm:$0xff]  ;;  %113 = vmatpush.bf16.msra.mxu0 %v757_v0  ;;  %149 = vmatpush.bf16.msra.mxu1 %v759_v1  ;;  %v126_v14 = vld [vmem:[#allocation5] sm:$0x3]  ;;  %s943_s9 = smov [#allocation8]  }
  0x10   :  { %v125_v4 = vld [vmem:[%s1086_s1] sm:$0x3]  ;;  %211 = vmatpush.bf16.msra.mxu2 %v759_v1  ;;  %276 = vmatpush.bf16.msra.mxu3 %v759_v1  ;;  %s696_s10 = sshll.u32 %s943_s9, 4  ;;  %s697_s10 = int_to_ptr.vmem [resolvable:$true] %s696_s10 }
  0x11   :  { %v755_v5 = vld [vmem:[#allocation2] sm:$0xff]  ;;  %v127_v6 = vpack.c.bf16 %v125_v4, %v125_v4 }
  0x12   :  { %v1016_v7 = vld [vmem:[%s1090_s5] ss:$0 sm:$0xff] }
  0x13   :  { %114 = vmatpush.bf16.msra.mxu0 %v756_v2  ;;  %150 = vmatpush.bf16.msra.mxu1 %v758_v3 }
  0x14   :  { %212 = vmatpush.bf16.msra.mxu2 %v758_v3  ;;  %277 = vmatpush.bf16.msra.mxu3 %v758_v3 }
  0x16   :  { %721 = vmatmul.msk.bf16.vlgmr.msra.gmra.mxu0 %vm103_vm0, %v755_v5  ;;  %730 = vmatmul.msk.bf16.vlgmr.msra.gmra.mxu1 %vm103_vm0, %v127_v6 }
  0x17   :  { %341 = vmatpush.bf16.msrb.mxu0 %v759_v1  ;;  %406 = vmatpush.bf16.msrb.mxu1 %v759_v1 }
  0x18   :  { %467 = vmatpush.bf16.msrb.mxu2 %v759_v1  ;;  %532 = vmatpush.bf16.msrb.mxu3 %v759_v1 }
  0x1b   :  { %342 = vmatpush.bf16.msrb.mxu0 %v758_v3  ;;  %407 = vmatpush.bf16.msrb.mxu1 %v758_v3 }
  0x1c   :  { %468 = vmatpush.bf16.msrb.mxu2 %v758_v3  ;;  %533 = vmatpush.bf16.msrb.mxu3 %v758_v3 }
  0x1f   :  { %597 = vmatpush.bf16.msra.mxu0 %v759_v1 }
  0x23   :  { %598 = vmatpush.bf16.msra.mxu0 %v758_v3 }
  0x93   :  { %v116_v8 = vpop.f32.mrf.mxu0  ;;  %v152_v9 = vpop.f32.mrf.mxu1 }
  0x94   :  { %v1019_v10 = vadd.f32 %v1016_v7, %v116_v8 }
  0x96   :  { %v156_v11 = vadd.f32 %v152_v9, %v1019_v10 }
  0x98   :  { %771 = vtanh.f32 %v156_v11  ;;  %v731_v15 = vmul.f32 -1.442695, %v156_v11 }
  0x9a   :  { %773 = vpow2.f32 %v731_v15 }
  0x9b   :  { %v154_v12 = vpop.f32.mrf.mxu1 }
  0x9e   :  { %v772_v13 = vpop.eup %771 }
  0x9f   :  { %183 = vrot.lane.b32.xlu0 %v772_v13, %s939_s15 }
  0xa0   :  { %v774_v16 = vpop.eup %773 }
  0xa1   :  { %v160_v17 = vadd.f32 1.0, %v774_v16 }
  0xa3   :  { %775 = vrcp.f32 %v160_v17  ;;  %v172_v23 = vand.u32 2147483648, %v160_v17  ;;  %vm166_vm2 = vweird.f32 %v160_v17  ;;  %v170_v24 = vand.u32 2147483647, %v160_v17 }
  0xa5   :  { %v173_v26 = vor.u32 1.1754944e-38, %v172_v23  ;;  %vm171_vm4 = vcmp.eq.f32.partialorder %v170_v24, 8.507059e+37 }
  0xa7   :  { %178 = vrot.lane.b32.xlu0 %v126_v14, %s942_s25 }
  0xa9   :  { %v776_v18 = vpop.eup %775 }
  0xaa   :  { %v162_v19 = vmul.f32 %v776_v18, %v160_v17  ;;  %vm167_vm1 = vweird.f32 %v776_v18 }
  0xab   :  { %vm168_vm3 = vmor %vm166_vm2, %vm167_vm1 }
  0xac   :  { %v163_v20 = vsub.f32 1.0, %v162_v19 }
  0xae   :  { %v164_v21 = vmul.f32 %v776_v18, %v163_v20 }
  0xb0   :  { %v165_v22 = vadd.f32 %v776_v18, %v164_v21 }
  0xb2   :  { %v169_v25 = vsel %vm168_vm3, %v776_v18, %v165_v22 }
  0xb3   :  { %v174_v28 = vsel %vm171_vm4, %v173_v26, %v169_v25 }
 0x111   :  { %v184_v27 = vpop.permute.xlu0 %183 }
 0x112   :  { %v186_v29 = vmul.f32 %v184_v27, %v174_v28 }
 0x114   :  { %188 = vrot.lane.b32.xlu1 %v186_v29, %s942_s25 }
 0x119   :  { %v179_v30 = vpop.permute.xlu0 %178 }
 0x11a   :  { %v181_v31 = vmul.f32 %v179_v30, %v174_v28 }
 0x186   :  { %v189_v32 = vpop.permute.xlu1 %188 }
 0x187   :  { %v191_v33 = vadd.f32 %v189_v32, %v181_v31 }
 0x189   :  { %777 = vtanh.f32 %v191_v33  ;;  %v243_v59 = vrot.slane %v191_v33, 6 }
 0x18f   :  { %v778_v34 = vpop.eup %777 }
 0x190   :  { %194 = vrot.lane.b32.xlu1 %v778_v34, %s939_s15 }
 0x202   :  { %v195_v35 = vpop.permute.xlu1 %194 }
 0x203   :  { %v197_v36 = vmul.f32 %v195_v35, %v174_v28 }
 0x205   :  { %v198_v37 = vpack.c.bf16 %v197_v36, %v197_v36 }
 0x207   :  { %200 = vrot.lane.b32.xlu2 %v198_v37, %s942_s25  ;;  %v118_v37 = vpop.f32.mrf.mxu0 }
 0x261   :  { %v201_v38 = vpop.permute.xlu2 %200 }
 0x262   :  { %732 = vmatmul.msk.bf16.vlgmr.msra.gmra.mxu2 %vm103_vm0, %v201_v38 }
 0x2e5   :  { %v214_v39 = vpop.f32.mrf.mxu2 }
 0x2e6   :  { %v219_v40 = vrot.slane %v214_v39, 6 }
 0x2e8   :  { %v221_v41 = vadd.f32 %v219_v40, %v1019_v10 }
 0x2ea   :  { %779 = vtanh.f32 %v221_v41  ;;  %v733_v44 = vmul.f32 -1.442695, %v221_v41 }
 0x2ec   :  { %781 = vpow2.f32 %v733_v44 }
 0x2ed   :  { %v216_v42 = vpop.f32.mrf.mxu2 }
 0x2f0   :  { %v780_v43 = vpop.eup %779 }
 0x2f1   :  { %247 = vrot.lane.b32.xlu2 %v780_v43, %s939_s15 }
 0x2f2   :  { %v782_v45 = vpop.eup %781 }
 0x2f3   :  { %v225_v46 = vadd.f32 1.0, %v782_v45 }
 0x2f5   :  { %783 = vrcp.f32 %v225_v46  ;;  %v237_v52 = vand.u32 2147483648, %v225_v46  ;;  %vm231_vm6 = vweird.f32 %v225_v46  ;;  %v235_v53 = vand.u32 2147483647, %v225_v46 }
 0x2f7   :  { %v238_v55 = vor.u32 1.1754944e-38, %v237_v52  ;;  %vm236_vm8 = vcmp.eq.f32.partialorder %v235_v53, 8.507059e+37 }
 0x2fb   :  { %v784_v47 = vpop.eup %783 }
 0x2fc   :  { %v227_v48 = vmul.f32 %v784_v47, %v225_v46  ;;  %vm232_vm5 = vweird.f32 %v784_v47 }
 0x2fd   :  { %vm233_vm7 = vmor %vm231_vm6, %vm232_vm5 }
 0x2fe   :  { %v228_v49 = vsub.f32 1.0, %v227_v48 }
 0x300   :  { %v229_v50 = vmul.f32 %v784_v47, %v228_v49 }
 0x302   :  { %v230_v51 = vadd.f32 %v784_v47, %v229_v50 }
 0x304   :  { %v234_v54 = vsel %vm233_vm7, %v784_v47, %v230_v51 }
 0x305   :  { %v239_v57 = vsel %vm236_vm8, %v238_v55, %v234_v54 }
 0x306   :  { %v245_v60 = vmul.f32 %v243_v59, %v239_v57 }
 0x34b   :  { %v248_v56 = vpop.permute.xlu2 %247 }
 0x34c   :  { %v250_v58 = vmul.f32 %v248_v56, %v239_v57 }
 0x34e   :  { %252 = vrot.lane.b32.xlu0 %v250_v58, %s942_s25 }
 0x3c0   :  { %v253_v61 = vpop.permute.xlu0 %252 }
 0x3c1   :  { %v255_v62 = vadd.f32 %v253_v61, %v245_v60 }
 0x3c3   :  { %785 = vtanh.f32 %v255_v62  ;;  %v308_v27 = vrot.slane %v255_v62, 6 }
 0x3c9   :  { %v786_v63 = vpop.eup %785 }
 0x3ca   :  { %258 = vrot.lane.b32.xlu1 %v786_v63, %s939_s15 }
 0x43c   :  { %v259_v0 = vpop.permute.xlu1 %258 }
 0x43d   :  { %v261_v1 = vmul.f32 %v259_v0, %v239_v57 }
 0x43f   :  { %v262_v2 = vpack.c.bf16 %v261_v1, %v261_v1 }
 0x441   :  { %v264_v3 = vrot.slane %v262_v2, 1 }
 0x443   :  { %265 = vrot.lane.b32.xlu2 %v264_v3, %s942_s25  ;;  %v1047_v3 = vadd.f32 %v1016_v7, %v118_v37 }
 0x49d   :  { %v266_v4 = vpop.permute.xlu2 %265 }
 0x49e   :  { %734 = vmatmul.msk.bf16.vlgmr.msra.gmra.mxu3 %vm103_vm0, %v266_v4 }
 0x521   :  { %v279_v5 = vpop.f32.mrf.mxu3 }
 0x522   :  { %v284_v6 = vrot.slane %v279_v5, 4 }
 0x524   :  { %v286_v8 = vadd.f32 %v284_v6, %v1019_v10 }
 0x526   :  { %787 = vtanh.f32 %v286_v8  ;;  %v735_v12 = vmul.f32 -1.442695, %v286_v8 }
 0x528   :  { %789 = vpow2.f32 %v735_v12 }
 0x529   :  { %v281_v9 = vpop.f32.mrf.mxu3 }
 0x52c   :  { %v788_v11 = vpop.eup %787 }
 0x52d   :  { %312 = vrot.lane.b32.xlu0 %v788_v11, %s939_s15 }
 0x52e   :  { %v790_v13 = vpop.eup %789 }
 0x52f   :  { %v290_v14 = vadd.f32 1.0, %v790_v13 }
 0x531   :  { %791 = vrcp.f32 %v290_v14  ;;  %v302_v20 = vand.u32 2147483648, %v290_v14  ;;  %vm296_vm10 = vweird.f32 %v290_v14  ;;  %v300_v21 = vand.u32 2147483647, %v290_v14 }
 0x533   :  { %v303_v23 = vor.u32 1.1754944e-38, %v302_v20  ;;  %vm301_vm12 = vcmp.eq.f32.partialorder %v300_v21, 8.507059e+37 }
 0x537   :  { %v792_v15 = vpop.eup %791 }
 0x538   :  { %v292_v16 = vmul.f32 %v792_v15, %v290_v14  ;;  %vm297_vm9 = vweird.f32 %v792_v15 }
 0x539   :  { %vm298_vm11 = vmor %vm296_vm10, %vm297_vm9 }
 0x53a   :  { %v293_v17 = vsub.f32 1.0, %v292_v16 }
 0x53c   :  { %v294_v18 = vmul.f32 %v792_v15, %v293_v17 }
 0x53e   :  { %v295_v19 = vadd.f32 %v792_v15, %v294_v18 }
 0x540   :  { %v299_v22 = vsel %vm298_vm11, %v792_v15, %v295_v19 }
 0x541   :  { %v304_v25 = vsel %vm301_vm12, %v303_v23, %v299_v22 }
 0x542   :  { %v310_v28 = vmul.f32 %v308_v27, %v304_v25 }
 0x59f   :  { %v313_v24 = vpop.permute.xlu0 %312 }
 0x5a0   :  { %v315_v26 = vmul.f32 %v313_v24, %v304_v25 }
 0x5a2   :  { %317 = vrot.lane.b32.xlu1 %v315_v26, %s942_s25 }
 0x614   :  { %v318_v29 = vpop.permute.xlu1 %317 }
 0x615   :  { %v320_v30 = vadd.f32 %v318_v29, %v310_v28 }
 0x617   :  { %793 = vtanh.f32 %v320_v30  ;;  %v373_v57 = vrot.slane %v320_v30, 6 }
 0x61d   :  { %v794_v31 = vpop.eup %793 }
 0x61e   :  { %323 = vrot.lane.b32.xlu2 %v794_v31, %s939_s15 }
 0x678   :  { %v324_v32 = vpop.permute.xlu2 %323 }
 0x679   :  { %v326_v33 = vmul.f32 %v324_v32, %v304_v25 }
 0x67b   :  { %v327_v34 = vpack.c.bf16 %v326_v33, %v326_v33 }
 0x67d   :  { %v329_v35 = vrot.slane %v327_v34, 2 }
 0x67f   :  { %330 = vrot.lane.b32.xlu0 %v329_v35, %s942_s25 }
 0x6f1   :  { %v331_v36 = vpop.permute.xlu0 %330 }
 0x6f2   :  { %736 = vmatmul.msk.bf16.vlgmr.msrb.gmra.mxu0 %vm103_vm0, %v331_v36 }
 0x76f   :  { %v344_v38 = vpop.f32.mrf.mxu0 }
 0x770   :  { %v349_v39 = vrot.slane %v344_v38, 2 }
 0x772   :  { %v351_v40 = vadd.f32 %v349_v39, %v1019_v10 }
 0x774   :  { %795 = vtanh.f32 %v351_v40  ;;  %v737_v43 = vmul.f32 -1.442695, %v351_v40 }
 0x776   :  { %797 = vpow2.f32 %v737_v43 }
 0x777   :  { %v346_v41 = vpop.f32.mrf.mxu0 }
 0x77a   :  { %v796_v42 = vpop.eup %795 }
 0x77b   :  { %377 = vrot.lane.b32.xlu1 %v796_v42, %s939_s15 }
 0x77c   :  { %v798_v44 = vpop.eup %797 }
 0x77d   :  { %v355_v45 = vadd.f32 1.0, %v798_v44 }
 0x77f   :  { %799 = vrcp.f32 %v355_v45  ;;  %v367_v51 = vand.u32 2147483648, %v355_v45  ;;  %vm361_vm14 = vweird.f32 %v355_v45  ;;  %v365_v52 = vand.u32 2147483647, %v355_v45 }
 0x781   :  { %v368_v53 = vor.u32 1.1754944e-38, %v367_v51  ;;  %vm366_vm1 = vcmp.eq.f32.partialorder %v365_v52, 8.507059e+37 }
 0x785   :  { %v800_v46 = vpop.eup %799 }
 0x786   :  { %v357_v47 = vmul.f32 %v800_v46, %v355_v45  ;;  %vm362_vm13 = vweird.f32 %v800_v46 }
 0x787   :  { %vm363_vm15 = vmor %vm361_vm14, %vm362_vm13 }
 0x788   :  { %v358_v48 = vsub.f32 1.0, %v357_v47 }
 0x78a   :  { %v359_v49 = vmul.f32 %v800_v46, %v358_v48 }
 0x78c   :  { %v360_v50 = vadd.f32 %v800_v46, %v359_v49 }
 0x78e   :  { %v364_v10 = vsel %vm363_vm15, %v800_v46, %v360_v50 }
 0x78f   :  { %v369_v55 = vsel %vm366_vm1, %v368_v53, %v364_v10 }
 0x790   :  { %v375_v58 = vmul.f32 %v373_v57, %v369_v55 }
 0x7ed   :  { %v378_v54 = vpop.permute.xlu1 %377 }
 0x7ee   :  { %v380_v56 = vmul.f32 %v378_v54, %v369_v55 }
 0x7f0   :  { %382 = vrot.lane.b32.xlu2 %v380_v56, %s942_s25 }
 0x84a   :  { %v383_v59 = vpop.permute.xlu2 %382 }
 0x84b   :  { %v385_v60 = vadd.f32 %v383_v59, %v375_v58 }
 0x84d   :  { %801 = vtanh.f32 %v385_v60  ;;  %v435_v24 = vrot.slane %v385_v60, 6 }
 0x853   :  { %v802_v61 = vpop.eup %801 }
 0x854   :  { %388 = vrot.lane.b32.xlu0 %v802_v61, %s939_s15 }
 0x8c6   :  { %v389_v62 = vpop.permute.xlu0 %388 }
 0x8c7   :  { %v391_v63 = vmul.f32 %v389_v62, %v369_v55 }
 0x8c9   :  { %v392_v0 = vpack.c.bf16 %v391_v63, %v391_v63 }
 0x8cb   :  { %v394_v1 = vrot.slane %v392_v0, 3 }
 0x8cd   :  { %395 = vrot.lane.b32.xlu1 %v394_v1, %s942_s25 }
 0x93f   :  { %v396_v2 = vpop.permute.xlu1 %395 }
 0x940   :  { %738 = vmatmul.msk.bf16.vlgmr.msrb.gmra.mxu1 %vm103_vm0, %v396_v2 }
 0x9bd   :  { %v409_v4 = vpop.f32.mrf.mxu1 }
 0x9be   :  { %v413_v5 = vadd.f32 %v409_v4, %v1047_v3 }
 0x9c0   :  { %803 = vtanh.f32 %v413_v5  ;;  %v739_v9 = vmul.f32 -1.442695, %v413_v5 }
 0x9c2   :  { %805 = vpow2.f32 %v739_v9 }
 0x9c5   :  { %v411_v6 = vpop.f32.mrf.mxu1 }
 0x9c6   :  { %v804_v8 = vpop.eup %803 }
 0x9c7   :  { %439 = vrot.lane.b32.xlu2 %v804_v8, %s939_s15 }
 0x9c8   :  { %v806_v11 = vpop.eup %805 }
 0x9c9   :  { %v417_v12 = vadd.f32 1.0, %v806_v11 }
 0x9cb   :  { %807 = vrcp.f32 %v417_v12  ;;  %v429_v7 = vand.u32 2147483648, %v417_v12  ;;  %vm423_vm3 = vweird.f32 %v417_v12  ;;  %v427_v18 = vand.u32 2147483647, %v417_v12 }
 0x9cd   :  { %v430_v20 = vor.u32 1.1754944e-38, %v429_v7  ;;  %vm428_vm5 = vcmp.eq.f32.partialorder %v427_v18, 8.507059e+37 }
 0x9d1   :  { %v808_v13 = vpop.eup %807 }
 0x9d2   :  { %v419_v14 = vmul.f32 %v808_v13, %v417_v12  ;;  %vm424_vm2 = vweird.f32 %v808_v13 }
 0x9d3   :  { %vm425_vm4 = vmor %vm423_vm3, %vm424_vm2  ;;  %vm689_vm3 = vcmask 25600  }
 0x9d4   :  { %v420_v15 = vsub.f32 1.0, %v419_v14 }
 0x9d6   :  { %v421_v16 = vmul.f32 %v808_v13, %v420_v15 }
 0x9d8   :  { %v422_v17 = vadd.f32 %v808_v13, %v421_v16 }
 0x9da   :  { %v426_v19 = vsel %vm425_vm4, %v808_v13, %v422_v17 }
 0x9db   :  { %v431_v22 = vsel %vm428_vm5, %v430_v20, %v426_v19 }
 0x9dc   :  { %v437_v25 = vmul.f32 %v435_v24, %v431_v22 }
 0xa21   :  { %v440_v21 = vpop.permute.xlu2 %439 }
 0xa22   :  { %v442_v23 = vmul.f32 %v440_v21, %v431_v22 }
 0xa24   :  { %444 = vrot.lane.b32.xlu0 %v442_v23, %s942_s25 }
 0xa96   :  { %v445_v26 = vpop.permute.xlu0 %444 }
 0xa97   :  { %v447_v27 = vadd.f32 %v445_v26, %v437_v25 }
 0xa99   :  { %809 = vtanh.f32 %v447_v27  ;;  %v499_v10 = vrot.slane %v447_v27, 6 }
 0xa9f   :  { %v810_v28 = vpop.eup %809 }
 0xaa0   :  { %450 = vrot.lane.b32.xlu1 %v810_v28, %s939_s15 }
 0xb12   :  { %v451_v29 = vpop.permute.xlu1 %450 }
 0xb13   :  { %v453_v30 = vmul.f32 %v451_v29, %v431_v22 }
 0xb15   :  { %v454_v31 = vpack.c.bf16 %v453_v30, %v453_v30 }
 0xb17   :  { %456 = vrot.lane.b32.xlu2 %v454_v31, %s942_s25 }
 0xb71   :  { %v457_v32 = vpop.permute.xlu2 %456 }
 0xb72   :  { %740 = vmatmul.msk.bf16.vlgmr.msrb.gmra.mxu2 %vm103_vm0, %v457_v32 }
 0xbf5   :  { %v470_v33 = vpop.f32.mrf.mxu2 }
 0xbf6   :  { %v475_v34 = vrot.slane %v470_v33, 6 }
 0xbf8   :  { %v477_v35 = vadd.f32 %v475_v34, %v1047_v3 }
 0xbfa   :  { %811 = vtanh.f32 %v477_v35  ;;  %v741_v38 = vmul.f32 -1.442695, %v477_v35 }
 0xbfc   :  { %813 = vpow2.f32 %v741_v38 }
 0xbfd   :  { %v472_v36 = vpop.f32.mrf.mxu2 }
 0xc00   :  { %v812_v37 = vpop.eup %811 }
 0xc01   :  { %503 = vrot.lane.b32.xlu0 %v812_v37, %s939_s15 }
 0xc02   :  { %v814_v39 = vpop.eup %813 }
 0xc03   :  { %v481_v40 = vadd.f32 1.0, %v814_v39 }
 0xc05   :  { %815 = vrcp.f32 %v481_v40  ;;  %v493_v46 = vand.u32 2147483648, %v481_v40  ;;  %vm487_vm7 = vweird.f32 %v481_v40  ;;  %v491_v47 = vand.u32 2147483647, %v481_v40 }
 0xc07   :  { %v494_v49 = vor.u32 1.1754944e-38, %v493_v46  ;;  %vm492_vm9 = vcmp.eq.f32.partialorder %v491_v47, 8.507059e+37 }
 0xc0b   :  { %v816_v41 = vpop.eup %815 }
 0xc0c   :  { %v483_v42 = vmul.f32 %v816_v41, %v481_v40  ;;  %vm488_vm6 = vweird.f32 %v816_v41 }
 0xc0d   :  { %vm489_vm8 = vmor %vm487_vm7, %vm488_vm6 }
 0xc0e   :  { %v484_v43 = vsub.f32 1.0, %v483_v42 }
 0xc10   :  { %v485_v44 = vmul.f32 %v816_v41, %v484_v43 }
 0xc12   :  { %v486_v45 = vadd.f32 %v816_v41, %v485_v44 }
 0xc14   :  { %v490_v48 = vsel %vm489_vm8, %v816_v41, %v486_v45 }
 0xc15   :  { %v495_v51 = vsel %vm492_vm9, %v494_v49, %v490_v48 }
 0xc16   :  { %v501_v53 = vmul.f32 %v499_v10, %v495_v51 }
 0xc73   :  { %v504_v50 = vpop.permute.xlu0 %503 }
 0xc74   :  { %v506_v52 = vmul.f32 %v504_v50, %v495_v51 }
 0xc76   :  { %508 = vrot.lane.b32.xlu1 %v506_v52, %s942_s25 }
 0xce8   :  { %v509_v54 = vpop.permute.xlu1 %508 }
 0xce9   :  { %v511_v55 = vadd.f32 %v509_v54, %v501_v53  ;;  %v761_v53 = vld [vmem:[%s1091_s6 + $0x8] sm:$0xff]  ;;  %v760_v54 = vld [vmem:[%s1091_s6] sm:$0xff]  ;;  %s698_s6 = sshll.u32 %s1093_s8, 4  ;;  %s699_s6 = int_to_ptr.hbm [resolvable:$true] %s698_s6 }
 0xcea   :  { %682 = vmatpush.bf16.msra.mxu1 %v761_v53 }
 0xceb   :  { %817 = vtanh.f32 %v511_v55  ;;  %v564_v20 = vrot.slane %v511_v55, 6 }
 0xcee   :  { %683 = vmatpush.bf16.msra.mxu1 %v760_v54 }
 0xcf1   :  { %v818_v56 = vpop.eup %817 }
 0xcf2   :  { %514 = vrot.lane.b32.xlu2 %v818_v56, %s939_s15 }
 0xd4c   :  { %v515_v57 = vpop.permute.xlu2 %514 }
 0xd4d   :  { %v517_v58 = vmul.f32 %v515_v57, %v495_v51 }
 0xd4f   :  { %v518_v59 = vpack.c.bf16 %v517_v58, %v517_v58 }
 0xd51   :  { %v520_v60 = vrot.slane %v518_v59, 1 }
 0xd53   :  { %521 = vrot.lane.b32.xlu0 %v520_v60, %s942_s25  ;;  %v770_v60 = vld [vmem:[%s1092_s7] ss:$0 sm:$0xff] }
 0xdc5   :  { %v522_v61 = vpop.permute.xlu0 %521 }
 0xdc6   :  { %742 = vmatmul.msk.bf16.vlgmr.msrb.gmra.mxu3 %vm103_vm0, %v522_v61 }
 0xe49   :  { %v535_v62 = vpop.f32.mrf.mxu3 }
 0xe4a   :  { %v540_v63 = vrot.slane %v535_v62, 4 }
 0xe4c   :  { %v542_v0 = vadd.f32 %v540_v63, %v1047_v3 }
 0xe4e   :  { %819 = vtanh.f32 %v542_v0  ;;  %v743_v4 = vmul.f32 -1.442695, %v542_v0 }
 0xe50   :  { %821 = vpow2.f32 %v743_v4 }
 0xe51   :  { %v537_v1 = vpop.f32.mrf.mxu3 }
 0xe54   :  { %v820_v2 = vpop.eup %819 }
 0xe55   :  { %568 = vrot.lane.b32.xlu1 %v820_v2, %s939_s15 }
 0xe56   :  { %v822_v5 = vpop.eup %821 }
 0xe57   :  { %v546_v6 = vadd.f32 1.0, %v822_v5 }
 0xe59   :  { %823 = vrcp.f32 %v546_v6  ;;  %v558_v14 = vand.u32 2147483648, %v546_v6  ;;  %vm552_vm11 = vweird.f32 %v546_v6  ;;  %v556_v15 = vand.u32 2147483647, %v546_v6 }
 0xe5b   :  { %v559_v17 = vor.u32 1.1754944e-38, %v558_v14  ;;  %vm557_vm13 = vcmp.eq.f32.partialorder %v556_v15, 8.507059e+37 }
 0xe5f   :  { %v824_v8 = vpop.eup %823 }
 0xe60   :  { %v548_v9 = vmul.f32 %v824_v8, %v546_v6  ;;  %vm553_vm10 = vweird.f32 %v824_v8 }
 0xe61   :  { %vm554_vm12 = vmor %vm552_vm11, %vm553_vm10 }
 0xe62   :  { %v549_v11 = vsub.f32 1.0, %v548_v9 }
 0xe64   :  { %v550_v12 = vmul.f32 %v824_v8, %v549_v11 }
 0xe66   :  { %v551_v13 = vadd.f32 %v824_v8, %v550_v12 }
 0xe68   :  { %v555_v16 = vsel %vm554_vm12, %v824_v8, %v551_v13 }
 0xe69   :  { %v560_v18 = vsel %vm557_vm13, %v559_v17, %v555_v16 }
 0xe6a   :  { %v566_v21 = vmul.f32 %v564_v20, %v560_v18 }
 0xec7   :  { %v569_v7 = vpop.permute.xlu1 %568 }
 0xec8   :  { %v571_v19 = vmul.f32 %v569_v7, %v560_v18 }
 0xeca   :  { %573 = vrot.lane.b32.xlu2 %v571_v19, %s942_s25 }
 0xf24   :  { %v574_v22 = vpop.permute.xlu2 %573 }
 0xf25   :  { %v576_v23 = vadd.f32 %v574_v22, %v566_v21 }
 0xf27   :  { %825 = vtanh.f32 %v576_v23  ;;  %v629_v49 = vrot.slane %v576_v23, 6 }
 0xf2d   :  { %v826_v24 = vpop.eup %825 }
 0xf2e   :  { %579 = vrot.lane.b32.xlu0 %v826_v24, %s939_s15 }
 0xfa0   :  { %v580_v25 = vpop.permute.xlu0 %579 }
 0xfa1   :  { %v582_v26 = vmul.f32 %v580_v25, %v560_v18 }
 0xfa3   :  { %v583_v27 = vpack.c.bf16 %v582_v26, %v582_v26 }
 0xfa5   :  { %v585_v28 = vrot.slane %v583_v27, 2 }
 0xfa7   :  { %586 = vrot.lane.b32.xlu1 %v585_v28, %s942_s25 }
0x1019   :  { %v587_v29 = vpop.permute.xlu1 %586 }
0x101a   :  { %744 = vmatmul.msk.bf16.vlgmr.msra.gmra.mxu0 %vm103_vm0, %v587_v29 }
0x1097   :  { %v600_v30 = vpop.f32.mrf.mxu0 }
0x1098   :  { %v605_v31 = vrot.slane %v600_v30, 2 }
0x109a   :  { %v607_v32 = vadd.f32 %v605_v31, %v1047_v3 }
0x109c   :  { %827 = vtanh.f32 %v607_v32  ;;  %v745_v35 = vmul.f32 -1.442695, %v607_v32 }
0x109e   :  { %829 = vpow2.f32 %v745_v35 }
0x109f   :  { %v602_v33 = vpop.f32.mrf.mxu0 }
0x10a2   :  { %v828_v34 = vpop.eup %827 }
0x10a3   :  { %633 = vrot.lane.b32.xlu2 %v828_v34, %s939_s15 }
0x10a4   :  { %v830_v36 = vpop.eup %829 }
0x10a5   :  { %v611_v37 = vadd.f32 1.0, %v830_v36 }
0x10a7   :  { %831 = vrcp.f32 %v611_v37  ;;  %v623_v43 = vand.u32 2147483648, %v611_v37  ;;  %vm617_vm15 = vweird.f32 %v611_v37  ;;  %v621_v44 = vand.u32 2147483647, %v611_v37 }
0x10a9   :  { %v624_v45 = vor.u32 1.1754944e-38, %v623_v43  ;;  %vm622_vm2 = vcmp.eq.f32.partialorder %v621_v44, 8.507059e+37 }
0x10ad   :  { %v832_v38 = vpop.eup %831 }
0x10ae   :  { %v613_v39 = vmul.f32 %v832_v38, %v611_v37  ;;  %vm618_vm14 = vweird.f32 %v832_v38 }
0x10af   :  { %vm619_vm1 = vmor %vm617_vm15, %vm618_vm14 }
0x10b0   :  { %v614_v40 = vsub.f32 1.0, %v613_v39 }
0x10b2   :  { %v615_v41 = vmul.f32 %v832_v38, %v614_v40 }
0x10b4   :  { %v616_v42 = vadd.f32 %v832_v38, %v615_v41 }
0x10b6   :  { %v620_v3 = vsel %vm619_vm1, %v832_v38, %v616_v42 }
0x10b7   :  { %v625_v47 = vsel %vm622_vm2, %v624_v45, %v620_v3 }
0x10b8   :  { %v631_v50 = vmul.f32 %v629_v49, %v625_v47 }
0x10fd   :  { %v634_v46 = vpop.permute.xlu2 %633 }
0x10fe   :  { %v636_v48 = vmul.f32 %v634_v46, %v625_v47 }
0x1100   :  { %638 = vrot.lane.b32.xlu0 %v636_v48, %s942_s25 }
0x1172   :  { %v639_v51 = vpop.permute.xlu0 %638 }
0x1173   :  { %v641_v52 = vadd.f32 %v639_v51, %v631_v50 }
0x1175   :  { %833 = vtanh.f32 %v641_v52 }
0x117b   :  { %v834_v10 = vpop.eup %833 }
0x117c   :  { %644 = vrot.lane.b32.xlu1 %v834_v10, %s939_s15 }
0x11ee   :  { %v645_v55 = vpop.permute.xlu1 %644 }
0x11ef   :  { %v647_v56 = vmul.f32 %v645_v55, %v625_v47 }
0x11f1   :  { %v648_v57 = vpack.c.bf16 %v647_v56, %v647_v56 }
0x11f3   :  { %v658_v58 = vrot.slane %v648_v57, 3 }
0x11f5   :  { %659 = vrot.lane.b32.xlu2 %v658_v58, %s942_s25 }
0x124f   :  { %v660_v59 = vpop.permute.xlu2 %659 }
0x1250   :  { %754 = vmatmul.msk.bf16.vlgmr.msra.gmra.mxu1 %vm103_vm0, %v660_v59 }
0x12cd   :  { %v685_v61 = vpop.f32.mrf.mxu1 }
0x12ce   :  { %v686_v62 = vadd.f32 %v770_v60, %v685_v61 }
0x12d0   :  { %690 = vst.msk [vmem:[#allocation8] sm:$0x3] %vm689_vm3, %v686_v62 }
0x12d1   :  { %701 = dma.vmem_to_hbm [thread:$0]  %s697_s10, 32, %s699_s6, [#allocation4]  }
0x12d5   :  { %v687_v63 = vpop.f32.mrf.mxu1 }
0x12d6   :  { %935 = dma.done.wait [#allocation4], 32  }
0x12d7   :  { %936 = vsyncadd [#allocation4], 4294967264 }
0x12d8   :  { %706 = vsyncpa [#allocation3], 1 }
0x12d9   :  { %707 = vsyncpa [#allocation6], 1 }
0x12da   :  { %708 = vsyncpa [#allocation4], 1 }

</bundles_post_ra>
